<compile_context>
chip_gen: v7x
topology: tpu7x:2x2x1
jax: 0.10.0
libtpu: 0.0.40
codegen_flags: <defaults>
</compile_context>

<pallas_src>
import jax
import jax.numpy as jnp
from jax.experimental import pallas as pl
from jax.experimental.pallas import tpu as pltpu


def _round_up(x, m):
    return ((x + m - 1) // m) * m


def _cdiv(a, b):
    return (a + b - 1) // b


# ----------------------------- kernels --------------------------------------


def _combine_sum_kernel(w_ref, b_ref, x_ref, y_ref, o_ref):
    # w_ref: (C2, C1)   b_ref: (C2, 1)
    # x_ref: (C1, TM)   y_ref: (C2, TM)   o_ref: (C2, TM)
    h = jnp.dot(w_ref[...], x_ref[...], preferred_element_type=jnp.float32)
    o_ref[...] = (h + b_ref[...] + y_ref[...].astype(jnp.float32)).astype(o_ref.dtype)


def _combine_cat_kernel(w_ref, b_ref, x_ref, y_ref, o_ref):
    # Fused channel concat: o_ref is (2*C2, TM); rows [0, C2) get conv1x1(x),
    # rows [C2, 2*C2) are a pure pass-through copy of y.
    # (Further v7x win possible: move y HBM->HBM with a manual async copy and
    #  drop it from the VMEM pipeline entirely; kept simple & fused here.)
    c2 = w_ref.shape[0]
    h = jnp.dot(w_ref[...], x_ref[...], preferred_element_type=jnp.float32)
    o_ref[0:c2, :] = (h + b_ref[...]).astype(o_ref.dtype)
    o_ref[c2:2 * c2, :] = y_ref[...].astype(o_ref.dtype)


def _conv1x1_kernel(w_ref, b_ref, x_ref, o_ref):
    # Conv-only kernel, used as the cat fallback when C2 is sublane-misaligned.
    h = jnp.dot(w_ref[...], x_ref[...], preferred_element_type=jnp.float32)
    o_ref[...] = (h + b_ref[...]).astype(o_ref.dtype)


# ----------------------------- wrapper ---------------------------------------


def _pick_tile(hw, n, bytes_per_col):
    """VMEM-budget-driven lane-tile width (multiple of 128)."""
    # ~8 MiB of double-buffered blocks: fits v5e's 16 MiB scoped default and
    # leaves >=4x headroom on v7x's 64 MiB VMEM.
    budget = 8 * 1024 * 1024
    tm = (budget // (2 * bytes_per_col)) // 128 * 128
    tm = max(128, min(tm, 8192))
    # Keep enough grid steps so the DMA pipeline overlaps and both v7x
    # TensorCores get work (>= ~8 total steps when the problem allows).
    target_steps = 8
    steps_per_n = max(1, _cdiv(target_steps, n))
    tm_steps = _round_up(max(1, _cdiv(hw, steps_per_n)), 128)
    return max(128, min(tm, tm_steps, _round_up(hw, 128)))


def combine_forward(x_nchw, y_nchw, weight, bias, method="sum"):
    """x_nchw: (N, C1, H, W), y_nchw: (N, C2, H, W)
    weight: (C2, C1)  (1x1 conv kernel, PyTorch (out, in) layout), bias: (C2,)"""
    N, C1, H, W = x_nchw.shape
    C2, C1w = weight.shape
    assert C1w == C1
    assert y_nchw.shape == (N, C2, H, W)
    if method not in ("sum", "cat"):
        raise ValueError(f"Method {method} not recognized.")
    HW = H * W
    itemsize = jnp.dtype(x_nchw.dtype).itemsize

    # Channels-major slabs (N, C, H*W): contiguous reshape, no transpose glue.
    x3 = x_nchw.reshape(N, C1, HW)
    y3 = y_nchw.reshape(N, C2, HW)
    b2 = bias.reshape(C2, 1)

    # Sublane alignment of the fused cat's second (y) store.
    sublane = max(8, 32 // itemsize)          # 8 (f32), 16 (bf16), 32 (int8)
    use_fused_cat = (method == "cat") and (C2 % sublane == 0)

    if method == "sum":
        c_out, kernel, y_in_pipe = C2, _combine_sum_kernel, True
        # Alias y with the output (same shape/dtype): donate its HBM buffer.
        aliases = {3: 0} if y_nchw.dtype == x_nchw.dtype else {}
    elif use_fused_cat:
        c_out, kernel, y_in_pipe = 2 * C2, _combine_cat_kernel, True
        aliases = {}
    else:
        c_out, kernel, y_in_pipe = C2, _conv1x1_kernel, False
        aliases = {}

    bytes_per_col = (C1 + (C2 if y_in_pipe else 0) + c_out) * itemsize
    tm = _pick_tile(HW, N, bytes_per_col)
    grid = (N, _cdiv(HW, tm))   # ragged boundary block masked by Pallas

    in_specs = [
        pl.BlockSpec((C2, C1), lambda n, m: (0, 0)),               # weight (resident)
        pl.BlockSpec((C2, 1), lambda n, m: (0, 0)),                # bias (resident)
        pl.BlockSpec((None, C1, tm), lambda n, m: (n, 0, m)),      # x tile
    ]
    operands = [weight, b2, x3]
    if y_in_pipe:
        in_specs.append(pl.BlockSpec((None, C2, tm), lambda n, m: (n, 0, m)))  # y tile
        operands.append(y3)

    cost = pl.CostEstimate(
        flops=2 * N * HW * C1 * C2,
        transcendentals=0,
        bytes_accessed=itemsize * (N * HW * (C1 + (C2 if y_in_pipe else 0) + c_out)
                                   + C1 * C2 + C2),
    )

    out3 = pl.pallas_call(
        kernel,
        out_shape=jax.ShapeDtypeStruct((N, c_out, HW), x_nchw.dtype),
        grid_spec=pltpu.PrefetchScalarGridSpec(
            num_scalar_prefetch=0,
            grid=grid,
            in_specs=in_specs,
            out_specs=pl.BlockSpec((None, c_out, tm), lambda n, m: (n, 0, m)),
        ),
        compiler_params=pltpu.CompilerParams(
            dimension_semantics=("parallel", "parallel")),
        cost_estimate=cost,
        input_output_aliases=aliases,
    )(*operands)

    if method == "cat" and not y_in_pipe:
        # Sublane-misaligned C2: concat in the wrapper instead of forcing
        # mid-sublane masked stores inside the kernel.
        out3 = jnp.concatenate([out3, y3.astype(out3.dtype)], axis=1)
        c_out = 2 * C2

    return out3.reshape(N, c_out, H, W)


# ----------------------------- test ------------------------------------------

if __name__ == "__main__":
    key = jax.random.PRNGKey(0)
    k_x, k_y, k_w = jax.random.split(key, 3)

    # Combine(dim1=4, dim2=8): Conv_0 = conv1x1(4, 8)
    N, C1, C2, H, W = 2, 4, 8, 16, 16

    x = jax.random.normal(k_x, (N, C1, H, W), dtype=jnp.float32)
    y = jax.random.normal(k_y, (N, C2, H, W), dtype=jnp.float32)

    # Deterministic parameters (variance-scaling-like weight, zero bias,
    # matching ddpm_conv1x1's default_init / zero-bias convention).
    scale = 1.0 / jnp.sqrt(jnp.float32(C1))
    weight = scale * jax.random.normal(k_w, (C2, C1), dtype=jnp.float32)  # (out, in)
    bias = jnp.zeros((C2,), dtype=jnp.float32)

    # References computed BEFORE the kernel calls (sum path aliases y's buffer).
    ref_sum = jnp.einsum("dc,nchw->ndhw", weight, x) + bias[None, :, None, None] + y
    ref_cat = jnp.concatenate(
        [jnp.einsum("dc,nchw->ndhw", weight, x) + bias[None, :, None, None], y],
        axis=1)

    # method='sum' (module default)
    out = jax.block_until_ready(combine_forward(x, y, weight, bias, method="sum"))
    assert out.shape == (N, C2, H, W)
    assert jnp.allclose(out, ref_sum, atol=1e-5, rtol=1e-5)

    # method='cat' (concat fused inside the kernel; C2=8 is sublane-aligned)
    out_cat = jax.block_until_ready(combine_forward(x, y, weight, bias, method="cat"))
    assert out_cat.shape == (N, 2 * C2, H, W)
    assert jnp.allclose(out_cat, ref_cat, atol=1e-5, rtol=1e-5)

    # Ragged pixel count (H*W not a multiple of 128): no wrapper pad/slice,
    # Pallas masks the boundary block.
    H2, W2 = 5, 7
    x2 = jax.random.normal(k_x, (N, C1, H2, W2), dtype=jnp.float32)
    y2 = jax.random.normal(k_y, (N, C2, H2, W2), dtype=jnp.float32)
    ref2 = jnp.einsum("dc,nchw->ndhw", weight, x2) + bias[None, :, None, None] + y2
    out2 = jax.block_until_ready(combine_forward(x2, y2, weight, bias, method="sum"))
    assert out2.shape == (N, C2, H2, W2)
    assert jnp.allclose(out2, ref2, atol=1e-5, rtol=1e-5)

    # Sublane-misaligned cat (C2=6): conv-only kernel + wrapper concat fallback.
    C2b = 6
    wb = scale * jax.random.normal(k_w, (C2b, C1), dtype=jnp.float32)
    bb = jnp.zeros((C2b,), dtype=jnp.float32)
    yb = jax.random.normal(k_y, (N, C2b, H, W), dtype=jnp.float32)
    refb = jnp.concatenate(
        [jnp.einsum("dc,nchw->ndhw", wb, x) + bb[None, :, None, None], yb], axis=1)
    outb = jax.block_until_ready(combine_forward(x, yb, wb, bb, method="cat"))
    assert outb.shape == (N, 2 * C2b, H, W)
    assert jnp.allclose(outb, refb, atol=1e-5, rtol=1e-5)

    print("KERNEL_OK")
</pallas_src>

<mosaic_0001>
module attributes {stable_mosaic.version = 11 : i64} {
  func.func @_combine_sum_kernel(%arg0: i32, %arg1: i32, %arg2: memref<8x4xf32, #tpu.memory_space<vmem>>, %arg3: memref<8x1xf32, #tpu.memory_space<vmem>>, %arg4: memref<1x4x128xf32, #tpu.memory_space<vmem>>, %arg5: memref<1x8x128xf32, #tpu.memory_space<vmem>>, %arg6: memref<1x8x128xf32, #tpu.memory_space<vmem>>) attributes {dimension_semantics = [#tpu.dimension_semantics<parallel>, #tpu.dimension_semantics<parallel>], iteration_bounds = array<i64: 2, 2>, scalar_prefetch = 0 : i64, scratch_operands = 0 : i64, tpu.core_type = #tpu.core_type<tc>, window_params = [{pipeline_mode = #tpu.pipeline_mode<synchronous>, transform_indices = @transform_0, window_bounds = array<i64: 8, 4>}, {pipeline_mode = #tpu.pipeline_mode<synchronous>, transform_indices = @transform_1, window_bounds = array<i64: 8, 1>}, {transform_indices = @transform_2, window_bounds = array<i64: 1, 4, 128>}, {transform_indices = @transform_3, window_bounds = array<i64: 1, 8, 128>}, {transform_indices = @transform_4, window_bounds = array<i64: 1, 8, 128>}]} {
    %c0 = arith.constant 0 : index
    %c0_0 = arith.constant 0 : index
    %0 = vector.load %arg2[%c0, %c0_0] : memref<8x4xf32, #tpu.memory_space<vmem>>, vector<8x4xf32>
    %c0_1 = arith.constant 0 : index
    %c0_2 = arith.constant 0 : index
    %c0_3 = arith.constant 0 : index
    %1 = vector.load %arg4[%c0_1, %c0_2, %c0_3] : memref<1x4x128xf32, #tpu.memory_space<vmem>>, vector<1x4x128xf32>
    %2 = vector.shape_cast %1 : vector<1x4x128xf32> to vector<4x128xf32>
    %cst = arith.constant dense<0.000000e+00> : vector<8x128xf32>
    %3 = tpu.matmul %0, %2, %cst {dimension_numbers = #tpu.dot_dimension_numbers<[1], [0], [0], [1], [0, 0, 1, 1], [], []>} : vector<8x4xf32>, vector<4x128xf32>, vector<8x128xf32> -> vector<8x128xf32>
    %c0_4 = arith.constant 0 : index
    %c0_5 = arith.constant 0 : index
    %4 = vector.load %arg3[%c0_4, %c0_5] : memref<8x1xf32, #tpu.memory_space<vmem>>, vector<8x1xf32>
    %5 = vector.broadcast %4 : vector<8x1xf32> to vector<8x128xf32>
    %6 = arith.addf %3, %5 : vector<8x128xf32>
    %c0_6 = arith.constant 0 : index
    %c0_7 = arith.constant 0 : index
    %c0_8 = arith.constant 0 : index
    %7 = vector.load %arg5[%c0_6, %c0_7, %c0_8] : memref<1x8x128xf32, #tpu.memory_space<vmem>>, vector<1x8x128xf32>
    %8 = vector.shape_cast %7 : vector<1x8x128xf32> to vector<8x128xf32>
    %9 = arith.addf %6, %8 : vector<8x128xf32>
    %c0_9 = arith.constant 0 : index
    %c0_10 = arith.constant 0 : index
    %c0_11 = arith.constant 0 : index
    %10 = vector.load %arg6[%c0_9, %c0_10, %c0_11] : memref<1x8x128xf32, #tpu.memory_space<vmem>>, vector<1x8x128xf32>
    %11 = vector.shape_cast %10 : vector<1x8x128xf32> to vector<8x128xf32>
    %12 = vector.shape_cast %9 : vector<8x128xf32> to vector<1x8x128xf32>
    tpu.vector_store %arg6[%c0_9, %c0_10, %c0_11], %12 {strides = array<i32>} : memref<1x8x128xf32, #tpu.memory_space<vmem>>, vector<1x8x128xf32>,
    return
  }
  func.func @transform_0(%arg0: i32, %arg1: i32) -> (i32, i32) {
    %c0_i32 = arith.constant 0 : i32
    %c0_i32_0 = arith.constant 0 : i32
    %c0_i32_1 = arith.constant 0 : i32
    return %c0_i32, %c0_i32_0 : i32, i32
  }
  func.func @transform_1(%arg0: i32, %arg1: i32) -> (i32, i32) {
    %c0_i32 = arith.constant 0 : i32
    %c0_i32_0 = arith.constant 0 : i32
    %c0_i32_1 = arith.constant 0 : i32
    return %c0_i32, %c0_i32_0 : i32, i32
  }
  func.func @transform_2(%arg0: i32, %arg1: i32) -> (i32, i32, i32) {
    %c0_i32 = arith.constant 0 : i32
    %c0_i32_0 = arith.constant 0 : i32
    return %arg0, %c0_i32, %arg1 : i32, i32, i32
  }
  func.func @transform_3(%arg0: i32, %arg1: i32) -> (i32, i32, i32) {
    %c0_i32 = arith.constant 0 : i32
    %c0_i32_0 = arith.constant 0 : i32
    return %arg0, %c0_i32, %arg1 : i32, i32, i32
  }
  func.func @transform_4(%arg0: i32, %arg1: i32) -> (i32, i32, i32) {
    %c0_i32 = arith.constant 0 : i32
    %c0_i32_0 = arith.constant 0 : i32
    return %arg0, %c0_i32, %arg1 : i32, i32, i32
  }
}

</mosaic_0001>

<bundles_post_ra>
// kernel: tpu_custom_call.1
= control target key start
LH: loop header
LB: loop body
LE: loop exit
PB: predicated region body
PF: predicated region fallthrough
CT: control target
= control target key end

     0   :  { %9 = vsyncpa [#allocation3], 0  ;;  %s949_s0 = inlined_call_operand.vmem [shape: f32[8,4], index: 0, kind: input, shape index: {}]   ;;  %s950_s1 = inlined_call_operand.vmem [shape: f32[8,1], index: 1, kind: input, shape index: {}]   ;;  %s951_s2 = inlined_call_operand.vmem [shape: f32[2,4,256], index: 2, kind: input, shape index: {}]   ;;  %s952_s3 = inlined_call_operand.hbm [shape: f32[2,8,256], index: 3, kind: input, shape index: {}, may-alias: {3,4}]   ;;  %s953_s4 = inlined_call_operand.hbm [shape: f32[2,8,256], index: 4, kind: output, shape index: {}, may-alias: {3,4}]  }
   0x1   :  { %11 = vsyncpa [#allocation3 + $0x1], 0 }
   0x2   :  { %12 = vsyncpa [#allocation4], 0 }
   0x3   :  { %14 = vsyncpa [#allocation4 + $0x1], 0  ;;  %s738_s15 = smov 0   ;;  %s740_s16 = smov 0  }
   0x4   :  { %s742_s17 = smov 0   ;;  %s744_s18 = smov 0  }
   0x5   :  { %s746_s19 = smov 0   ;;  %s748_s20 = smov 0  }
   0x6   :  { %s750_s21 = smov 0   ;;  %s752_s22 = smov 0  }
   0x7 LB: > { %s470_s23 = sadd.s32 4294967295, %s706_s22   ;;  %s471_s24 = sadd.s32 4294967294, %s706_s22   ;;  %s706_s22 = sphi %s752_s22, %s20_s22   ;;  %s702_s21 = sphi %s750_s21, %s975_s21   ;;  %s698_s20 = sphi %s748_s20, %s974_s20   ;;  %s694_s19 = sphi %s746_s19, %s973_s19   ;;  %s690_s18 = sphi %s744_s18, %s972_s18   ;;  %s686_s17 = sphi %s742_s17, %s971_s17   ;;  %s682_s16 = sphi %s740_s16, %s970_s16   ;;  %s678_s15 = sphi %s738_s15, %s969_s15  }
   0x8   : > { %s29_s25 = sadd.s32 1, %s698_s20  ;;  %s32_s26 = sadd.s32 1, %s702_s21 }
   0x9   : > { %p30_p0 = scmp.ge.s32.totalorder %s29_s25, 2  ;;  %s111_s27 = sadd.s32 1, %s686_s17 }
   0xa   : > { %p118_p1 = scmp.ne.s32.totalorder %s686_s17, %s682_s16  ;;  %p119_p2 = scmp.eq.s32.totalorder %s706_s22, 0 }
   0xb   : > { %s977_s25 = smov (%p30_p0, %s29_s25), 0  ;;  %s979_s26 = smov (!%p30_p0, %s32_s26), %s702_s21 }
   0xc   : > { %s107_s28 = ssub.s32 %s698_s20, %s977_s25  ;;  %p791_p3 = por %p119_p2, %p118_p1 }
   0xd   : > { %p34_p4 = scmp.ge.s32.totalorder %s979_s26, 2  ;;  %p124_p5 = scmp.ne.s32.totalorder %s682_s16, %s678_s15 }
   0xe   : > { %p125_p6 = scmp.eq.s32.totalorder %s470_s23, 0  ;;  %p150_p7 = scmp.eq.s32.totalorder %s470_s23, 3 }
   0xf   : > { %s981_s26 = smov (%p34_p4, %s979_s26), 0  ;;  %p156_p10 = scmp.eq.s32.totalorder %s471_s24, 3 }
  0x10   : > { %958 = sst [smem:[#allocation8_spill]] %s981_s26  ;;  %p799_p8 = por %p125_p6, %p124_p5 }
  0x11   : > { %p803_p9 = por %p150_p7, %p118_p1  ;;  %s106_s6 = ssub.s32 %s702_s21, %s981_s26 }
  0x12   : > { %s108_s7 = sor.u32 %s107_s28, %s106_s6  ;;  %p809_p12 = por %p156_p10, %p124_p5 }
  0x13   : > { %s960_s5 = scalar_select %p803_p9, 1, 0 }
  0x14   : > { %p109_p11 = scmp.eq.s32.totalorder %s108_s7, 0  ;;  %p508_p13 = scmp.lt.s32.totalorder %s706_s22, 4 }
  0x15   : > { %s961_s8 = scalar_select %p809_p12, 1, 0 }
  0x16   : > { %s193_s9 = sand.u32 1, %s686_s17   ;;  %s475_s12 = sshll.u32 %s702_s21, 1 }
  0x17   : > { %s816_s10 = scalar_select %p109_p11, %s686_s17, %s111_s27  }
  0x18   : > { %s474_s11 = sshll.u32 %s193_s9, 3  ;;  %s202_s13 = sadd.s32 %s698_s20, %s475_s12 }
  0x19   : > { %s197_s14 = scalar_lea.vmem [#allocation2], %s474_s11  ;;  %s476_s26 = sshll.u32 %s202_s13, 7 }
  0x1a   : > { %s206_s23 = sshll.u32 %s197_s14, 4  ;;  %s825_s6 = scalar_lea.hbm %s952_s3, %s476_s26  ;;  %s820_s23 = int_to_ptr.vmem [resolvable:$true] %s206_s23 }
  0x1b   : > { %p829_p0 = pnand %p508_p13, %p791_p3  ;;  %s194_s7 = scalar_lea.sflag [#allocation3], %s193_s9 }
  0x1c   : > { %s578_s11 = scalar_lea.hbm %s825_s6, 128  ;;  %s583_s12 = scalar_lea.hbm %s952_s3, 512 }
  0x1d   : > { %p579_p4 = scmp.ne.s32.totalorder %s825_s6, %s578_s11  ;;  %p580_p5 = pneg %p829_p0 }
  0x1e   : > { %p584_p3 = scmp.lt.u32.totalorder %s825_s6, %s952_s3  ;;  %p585_p10 = scmp.lt.u32.totalorder %s583_s12, %s578_s11 }
  0x1f   : > { %p581_p6 = pnand %p580_p5, %p579_p4  ;;  %p587_p13 = scmp.lt.u32.totalorder %s578_s11, %s825_s6 }
  0x20   : > { %p586_p11 = por %p585_p10, %p584_p3 }
  0x21   : > { %p582_p7 = pneg %p581_p6 }
  0x22   : > { %p588_p1 = por %p587_p13, %p586_p11 }
  0x24   : > { %p589_p2 = pnand %p588_p1, %p582_p7 }
  0x26   : > { %592 = shalt.err (!%p589_p2)
}
  0x27   : > { %s593_s9 = scalar_lea.vmem %s820_s23, 128  ;;  %s708_s24 = smov [#allocation2]  }
  0x28   : > { %p594_p4 = scmp.ne.s32.totalorder %s820_s23, %s593_s9  ;;  %s598_s28 = sshll.u32 %s708_s24, 4  ;;  %s599_s28 = int_to_ptr.vmem [resolvable:$false] %s598_s28 }
  0x29   : > { %s600_s26 = scalar_lea.vmem %s599_s28, 256  ;;  %p601_p9 = scmp.lt.s32.totalorder %s820_s23, %s599_s28 }
  0x2a   : > { %p596_p6 = pnand %p594_p4, %p580_p5  ;;  %p602_p3 = scmp.lt.s32.totalorder %s600_s26, %s593_s9 }
  0x2c   : > { %p597_p12 = pneg %p596_p6  ;;  %p603_p10 = por %p602_p3, %p601_p9 }
  0x2e   : > { %p604_p11 = pnand %p603_p10, %p597_p12 }
  0x30   : > { %607 = shalt.err (!%p604_p11)
}
  0x31   : > { %503 = dma.hbm_to_vmem [thread:$0]  (!%p829_p0), %s825_s6, 128, %s820_s23, %s194_s7  }
  0x32   : > { %p963_p1 = scmp.lt.s32.totalorder %s706_s22, 5  ;;  %p964_p2 = scmp.ge.s32.totalorder %s706_s22, 1 }
  0x34   : > { %p212_p5 = pnand %p964_p2, %p963_p1 }
  0x35   : > { %s865_s11 = sand.u32 (!%p212_p5), 1, %s682_s16  }
  0x36   : > { %215 = sbr.rel (%p212_p5) target bundleno = 302 (0x12e), region = 36  ;;  %s956_s29 = sshll.u32 (!%p212_p5), %s865_s11, 3 }
  0x37   : > { %s218_s12 = scalar_lea.sflag (!%p212_p5), [#allocation3], %s865_s11  ;;  %s221_s27 = scalar_lea.vmem (!%p212_p5), [#allocation2], %s956_s29 }
  0x3d   : > { %669 = dma.done.wait (%p799_p8), %s218_s12, 128  }
  0x3e   : > { %671 = vsyncadd (%p799_p8), %s218_s12, 4294967168  ;;  %p254_p9 = scmp.lt.s32.totalorder %s694_s19, 1  ;;  %p256_p12 = scmp.lt.s32.totalorder %s690_s18, 1  ;;  %v709_v0 = vmov 0.0   ;;  %vm710_vm0 = vmmov 0   ;;  %v711_v1 = vmov 0  }
  0x3f   : > { %491 = vmatprep.subr.mxu0 %v709_v0  ;;  %493 = vmatprep.mubr.msk.f32.mxu0 %vm710_vm0, %v709_v0  ;;  %vm274_vm1 = vcmask 1043456   ;;  %v262_v2 = vld [vmem:[%s949_s0] sm:$0xff]  ;;  %vm270_vm2 = vcmask 31744   ;;  %p966_p0 = scmp.ne.s32.totalorder %s960_s5, 0 }
  0x40   : > { %s255_s23 = scalar_select %p254_p9, %s694_s19, 1  ;;  %577 = vset.pattern.permute.xlu0 %v711_v1  ;;  %v264_v3 = vld [vmem:[%s950_s1] sm:$0xff] }
  0x41   : > { %s257_s6 = scalar_select %p256_p12, %s690_s18, 1  ;;  %267 = vperm.xlu0 %577, %v264_v3   ;;  %v348_v7 = vld [vmem:[%s221_s27] sm:$0xff] }
  0x42   : > { %s480_s7 = sshll.u32 %s255_s23, 1  ;;  %s485_s23 = sshll.u32 %s694_s19, 1 }
  0x43   : > { %s259_s13 = sadd.s32 %s480_s7, %s257_s6  ;;  %s363_s6 = sadd.s32 %s690_s18, %s485_s23 }
  0x44   : > { %s481_s30 = sshll.u32 %s259_s13, 2  ;;  %s486_s7 = sshll.u32 %s363_s6, 7 }
  0x45   : > { %s261_s24 = scalar_lea.vmem %s951_s2, %s481_s30  ;;  %s965_s13 = sshll.u32 %s865_s11, 3 }
  0x46   : > { %v263_v4 = vld [vmem:[%s261_s24] sm:$0xf]  ;;  %s253_s30 = scalar_lea.vmem [#allocation5], %s965_s13  ;;  %s895_s24 = scalar_lea.hbm %s953_s4, %s486_s7 }
  0x47   : > { %492 = vmatpush3.msk.msra.mxu0 %vm274_vm1, %v263_v4  ;;  %s367_s14 = sshll.u32 %s253_s30, 4  ;;  %s352_s18 = scalar_lea.sflag [#allocation4], %s865_s11  ;;  %s897_s14 = int_to_ptr.vmem [resolvable:$true] %s367_s14 }
  0x48   : > { %494 = vmatmul.mubr.msk.f32.vlgmr.msra.gmra.mrb[0].mxu0 %vm270_vm2, %v262_v2  ;;  %s608_s19 = scalar_lea.vmem %s897_s14, 128  ;;  %s712_s27 = smov [#allocation5]  }
  0x49   : > { %p609_p8 = scmp.ne.s32.totalorder %s897_s14, %s608_s19  ;;  %s612_s28 = sshll.u32 %s712_s27, 4  ;;  %s613_s28 = int_to_ptr.vmem [resolvable:$false] %s612_s28 }
  0x4a   : > { %s614_s26 = scalar_lea.vmem %s613_s28, 256  ;;  %p615_p4 = scmp.lt.s32.totalorder %s897_s14, %s613_s28 }
  0x4b   : > { %p610_p7 = pnand %p609_p8, %p966_p0  ;;  %p616_p6 = scmp.lt.s32.totalorder %s614_s26, %s608_s19 }
  0x4d   : > { %p611_p13 = pneg %p610_p7  ;;  %p617_p3 = por %p616_p6, %p615_p4 }
  0x4f   : > { %p618_p10 = pnand %p617_p3, %p611_p13 }
  0xc0   : > { %v268_v5 = vpop.permute.xlu0 %267 }
 0x11b   : > { %v344_v6 = vpop.f32.mrb[0].mxu0 }
 0x11c   : > { %v345_v8 = vadd.f32 %v344_v6, %v268_v5  ;;  %v495_v9 = vpop.f32.mrb[1].mxu0 }
 0x11e   : > { %v349_v10 = vadd.f32 %v348_v7, %v345_v8 }
 0x120   : > { %350 = vst [vmem:[%s253_s30] sm:$0xff] %v349_v10 }
 0x121   : > { %621 = shalt.err (!%p618_p10)
}
 0x122   : > { %s622_s11 = scalar_lea.hbm %s895_s24, 128  ;;  %s626_s6 = scalar_lea.hbm %s953_s4, 512 }
 0x123   : > { %p623_p11 = scmp.ne.s32.totalorder %s895_s24, %s622_s11  ;;  %p627_p5 = scmp.lt.u32.totalorder %s895_s24, %s953_s4 }
 0x124   : > { %p628_p9 = scmp.lt.u32.totalorder %s626_s6, %s622_s11  ;;  %p630_p8 = scmp.lt.u32.totalorder %s622_s11, %s895_s24 }
 0x125   : > { %p624_p1 = pnand %p623_p11, %p966_p0 }
 0x126   : > { %p629_p12 = por %p628_p9, %p627_p5 }
 0x127   : > { %p625_p2 = pneg %p624_p1 }
 0x128   : > { %p631_p7 = por %p630_p8, %p629_p12 }
 0x12a   : > { %p632_p13 = pnand %p631_p7, %p625_p2 }
 0x12c   : > { %635 = shalt.err (!%p632_p13)
}
 0x12d   : > { %498 = dma.vmem_to_hbm [thread:$0]  (%p966_p0), %s897_s14, 128, %s895_s24, %s352_s18  }
 0x12e PF: > { %p509_p4 = scmp.ge.s32.totalorder %s706_s22, 2  ;;  %s379_s30 = sand.u32 1, %s678_s15  }
 0x12f   : > { %p967_p6 = scmp.ne.s32.totalorder %s961_s8, 0  ;;  %s380_s29 = scalar_lea.sflag [#allocation4], %s379_s30 }
 0x131   : > { %p505_p3 = pnand %p509_p4, %p967_p6 }
 0x133   : > { %673 = dma.done.wait (!%p505_p3), %s380_s29, 128  }
 0x134   : > { %675 = vsyncadd (!%p505_p3), %s380_s29, 4294967168  ;;  %s20_s22 = sadd.s32 1, %s706_s22   ;;  %s968_s5 = sld [smem:[#allocation8_spill]] }
 0x135   : > { %p17_p10 = scmp.ge.s32.totalorder %s20_s22, 6   ;;  %s969_s15 = smov %s682_s16 }
 0x136   : > { %s970_s16 = smov %s686_s17  ;;  %s971_s17 = smov %s816_s10 }
 0x137   : > { %s972_s18 = smov %s698_s20  ;;  %s973_s19 = smov %s702_s21 }
 0x138   : > { %s974_s20 = smov %s977_s25  ;;  %19 = sbr.rel (!%p17_p10) target bundleno = 7 (0x7), region = 84 }
 0x13a   : > { %s975_s21 = smov %s968_s5 }
 0x13f   :  { %385 = vsyncpa [#allocation3], 1 }
 0x140   :  { %387 = vsyncpa [#allocation3 + $0x1], 1 }
 0x141   :  { %388 = vsyncpa [#allocation4], 1 }
 0x142   :  { %390 = vsyncpa [#allocation4 + $0x1], 1 }

</bundles_post_ra>
